<compile_context>
chip_gen: v6e
topology: v6e:2x2x1
jax: 0.10.0
libtpu: 0.0.40
codegen_flags: <defaults>
</compile_context>

<pallas_src>
import functools

import jax
import jax.numpy as jnp
from jax.experimental import pallas as pl
from jax.experimental.pallas import tpu as pltpu


# ----------------------------- in-kernel helpers -----------------------------

def _erf(x):
    # Abramowitz & Stegun 7.1.26 (|err| < 1.5e-7); exp goes to the EUP, the divide
    # is an approximate reciprocal (EUP slot, effectively free).
    a1, a2, a3, a4, a5 = (0.254829592, -0.284496736, 1.421413741,
                          -1.453152027, 1.061405429)
    pp = 0.3275911
    ax = jnp.abs(x)
    t = pl.reciprocal(1.0 + pp * ax, approx=True)
    poly = ((((a5 * t + a4) * t + a3) * t + a2) * t + a1) * t
    y = 1.0 - poly * jnp.exp(-ax * ax)
    return jnp.where(x >= 0, y, -y)


def _gelu_exact(x):
    return 0.5 * x * (1.0 + _erf(x * 0.7071067811865476))


# --------------------------------- kernel ------------------------------------

def rand_kernel(x_ref, xt_ref, wfc_ref, bfc_ref, S_ref, E_ref,
                w1c_ref, b1c_ref, w2c_ref, b2c_ref, y_ref, feats_ref):
    n = S_ref.shape[0]
    x = x_ref[0]          # (T, LD) f32, lanes = folded (batch, feature)
    xt = xt_ref[0]        # (T, LD) f32, precomputed x_trend

    # --- Normalization: mean / biased variance over time (no eps, like the module).
    mu = jnp.mean(x, axis=0, keepdims=True)
    var = jnp.mean((x - mu) ** 2, axis=0, keepdims=True)
    x_norm = (x - mu) * jax.lax.rsqrt(var)                        # rsqrt -> EUP

    # --- BackBone: Linear(seq_len -> H) along time; bf16 MXU operands, f32 acc.
    x_out = jnp.dot(wfc_ref[...], x_norm.astype(jnp.bfloat16),
                    preferred_element_type=jnp.float32) + bfc_ref[...]   # (H, LD)

    # --- ResolutionAdaptiveSlicing stats (exact f32 matmuls with S/E).
    S = S_ref[...]        # (n, T): 1/L_slice inside slice, else 0
    E = E_ref[...]        # (T, n): slice membership indicator
    u_I = jnp.dot(S, x, preferred_element_type=jnp.float32)              # (n, LD)
    u_t = jnp.dot(S, xt, preferred_element_type=jnp.float32)             # (n, LD)
    u_R = u_I - u_t                                                      # S@(x - xt)
    mI = jnp.dot(E, u_I, preferred_element_type=jnp.float32)             # (T, LD)
    mt = jnp.dot(E, u_t, preferred_element_type=jnp.float32)
    dI = x - mI
    dt = xt - mt
    dR = dI - dt
    s_I = jnp.dot(S, dI * dI, preferred_element_type=jnp.float32)
    s_t = jnp.dot(S, dt * dt, preferred_element_type=jnp.float32)
    s_R = jnp.dot(S, dR * dR, preferred_element_type=jnp.float32)

    # Assemble feats in a VMEM scratch at static sublane offsets (no concat retiling).
    feats_ref[0 * n:1 * n, :] = u_I
    feats_ref[1 * n:2 * n, :] = u_t
    feats_ref[2 * n:3 * n, :] = u_R
    feats_ref[3 * n:4 * n, :] = s_I
    feats_ref[4 * n:5 * n, :] = s_t
    feats_ref[5 * n:6 * n, :] = s_R
    feats = feats_ref[...].astype(jnp.bfloat16)                          # (6n, LD)

    # --- Fused MLPs: W1 = [W1_u; W1_sigma], W2 = blockdiag(W2_u, W2_sigma).
    h = jnp.dot(w1c_ref[...], feats,
                preferred_element_type=jnp.float32) + b1c_ref[...]       # (2F, LD)
    h = _gelu_exact(h)
    out2 = jnp.dot(w2c_ref[...], h.astype(jnp.bfloat16),
                   preferred_element_type=jnp.float32) + b2c_ref[...]    # (2H, LD)

    Hd = y_ref.shape[1]
    u_hat = out2[:Hd]
    sigma_hat = out2[Hd:]

    # Extention: out_dim == H so repeat_interleave factor is 1 (identity).
    y_ref[0] = x_out * sigma_hat + u_hat


# ------------------------------- JAX glue -------------------------------------

def _topk_axis1(a, k):
    v, i = jax.lax.top_k(jnp.moveaxis(a, 1, -1), k)
    return jnp.moveaxis(v, -1, 1), jnp.moveaxis(i, -1, 1)


def _avgpool_cumsum(x_r, p):
    # TODO(synk): `avgpool` is referenced but never defined in the PyTorch source;
    # implemented as a length-preserving, edge-clipped centered moving average with
    # per-(b, m, d) window size p, via cumulative sums (O(b*m*T*d), no O(T^2) mask).
    b, T, d = x_r.shape
    m = p.shape[1]
    csum = jnp.concatenate(
        [jnp.zeros((b, 1, d), x_r.dtype), jnp.cumsum(x_r, axis=1)], axis=1)  # (b,T+1,d)
    t = jnp.arange(T, dtype=jnp.int32).reshape(1, 1, T, 1)
    pe = p[:, :, None, :]                                       # (b, m, 1, d)
    lo = jnp.clip(t - (pe - 1) // 2, 0, T - 1)
    hi = jnp.clip(t + pe // 2, 0, T - 1)
    cs = jnp.broadcast_to(csum[:, None, :, :], (b, m, T + 1, d))
    s_hi = jnp.take_along_axis(cs, hi + 1, axis=2)
    s_lo = jnp.take_along_axis(cs, lo, axis=2)
    cnt = (hi - lo + 1).astype(x_r.dtype)
    return (s_hi - s_lo) / cnt                                  # (b, m, T, d)


def rand_forward(params, x_input, trainset=None, *, seq_len, L_slice, H, m):
    # GlobalMultiPeriodicityExtractor only feeds cal_Lslice, which returns the
    # constant L_slice, so its output never reaches y_out; dead branch dropped.
    del trainset
    b, T, d = x_input.shape
    n = seq_len // L_slice
    Fdim = 6 * n

    # --- Local multi-periodicity extractor (FFT + top-k): XLA glue, no Pallas FFT.
    x_DFT = jnp.fft.fft(x_input, axis=1)
    a_top, idx = _topk_axis1(jnp.abs(x_DFT), m)
    f = idx + 1
    p = jnp.ceil(T / f).astype(jnp.int32)                        # (b, m, d)

    # --- Decomposition pre-compute in the wrapper: only x_trend (b, T, d) is shipped
    # to the kernel (kills the m-fold apool HBM stream).
    # TODO(synk): x_sea = real(ifft(fft(x))) is the module's literal identity
    # round-trip, so x_r ~ 0 up to FFT rounding; kept for semantic fidelity.
    x_sea = jnp.real(jnp.fft.ifft(x_DFT, axis=1)).astype(x_input.dtype)
    x_r = x_input - x_sea
    apool = _avgpool_cumsum(x_r, p)                              # (b, m, T, d)
    w_kernel = jax.nn.softmax(a_top, axis=1)                     # (b, m, d)
    x_trend = jnp.einsum('bmd,bmtd->btd', w_kernel, apool)       # (b, T, d)

    # --- Slice-averaging matrices for cal_u_sigma (exact, kept f32).
    slice_id = jnp.arange(T) // L_slice
    E = (slice_id[:, None] == jnp.arange(n)[None, :]).astype(jnp.float32)   # (T, n)
    S = E.T / float(L_slice)                                                # (n, T)

    # --- Pack / fuse the weights once (bf16 MXU operands, f32 biases).
    wfc, bfc, w1u, b1u, w2u, b2u, w1s, b1s, w2s, b2s = params
    wfc_b = wfc.astype(jnp.bfloat16)                                        # (H, T)
    w1c = jnp.concatenate([w1u, w1s], axis=0).astype(jnp.bfloat16)          # (2F, F)
    w2c = jnp.zeros((2 * H, 2 * Fdim), jnp.float32)
    w2c = w2c.at[:H, :Fdim].set(w2u).at[H:, Fdim:].set(w2s).astype(jnp.bfloat16)

    # --- Lane folding: lane-dense floor BC = ceil(128/d); widen chunks up to ~512
    # lanes while the real batch can fill them (fewer, fatter grid steps).
    BC = max(1, pl.cdiv(128, d))
    while BC * d < 512 and b >= 2 * BC:
        BC *= 2
    nchunks = pl.cdiv(b, BC)
    Bpad = nchunks * BC
    LD = BC * d

    def fold(z):
        if Bpad > b:   # edge-pad with the last real batch (keeps padded lanes finite)
            z = jnp.concatenate(
                [z, jnp.broadcast_to(z[b - 1:b], (Bpad - b,) + z.shape[1:])], axis=0)
        return z.reshape(nchunks, BC, T, d).transpose(0, 2, 1, 3).reshape(nchunks, T, LD)

    x_fold = fold(x_input.astype(jnp.float32))
    xt_fold = fold(x_trend.astype(jnp.float32))

    # Biases pre-tiled to the lane width (no per-use broadcast_in_dim in the kernel).
    bfc_b = jnp.broadcast_to(bfc.astype(jnp.float32), (H, LD))
    b1c_b = jnp.broadcast_to(jnp.concatenate([b1u, b1s], axis=0), (2 * Fdim, LD))
    b2c_b = jnp.broadcast_to(jnp.concatenate([b2u, b2s], axis=0), (2 * H, LD))

    y_fold = pl.pallas_call(
        rand_kernel,
        out_shape=jax.ShapeDtypeStruct((nchunks, H, LD), jnp.float32),
        grid_spec=pltpu.PrefetchScalarGridSpec(
            num_scalar_prefetch=0,
            grid=(nchunks,),
            in_specs=[
                pl.BlockSpec((1, T, LD), lambda i: (i, 0, 0)),        # x (folded)
                pl.BlockSpec((1, T, LD), lambda i: (i, 0, 0)),        # x_trend (folded)
                pl.BlockSpec((H, T), lambda i: (0, 0)),               # backbone W (bf16)
                pl.BlockSpec((H, LD), lambda i: (0, 0)),              # backbone bias
                pl.BlockSpec((n, T), lambda i: (0, 0)),               # S (f32)
                pl.BlockSpec((T, n), lambda i: (0, 0)),               # E (f32)
                pl.BlockSpec((2 * Fdim, Fdim), lambda i: (0, 0)),     # fused MLP W1 (bf16)
                pl.BlockSpec((2 * Fdim, LD), lambda i: (0, 0)),       # fused MLP b1
                pl.BlockSpec((2 * H, 2 * Fdim), lambda i: (0, 0)),    # block-diag W2 (bf16)
                pl.BlockSpec((2 * H, LD), lambda i: (0, 0)),          # fused MLP b2
            ],
            out_specs=pl.BlockSpec((1, H, LD), lambda i: (i, 0, 0)),
            scratch_shapes=[pltpu.VMEM((6 * n, LD), jnp.float32)],
        ),
        compiler_params=pltpu.CompilerParams(
            dimension_semantics=("parallel",),
            vmem_limit_bytes=32 * 1024 * 1024,
        ),
    )(x_fold, xt_fold, wfc_b, bfc_b, S, E, w1c, b1c_b, w2c, b2c_b)

    # Unfold lanes back to (batch, H, d) and drop batch padding.
    y = y_fold.reshape(nchunks, H, BC, d).transpose(0, 2, 1, 3).reshape(Bpad, H, d)
    return y[:b]


# ---------------------------------- main --------------------------------------

if __name__ == "__main__":
    # Small shapes consistent with RAND's constraints:
    # seq_len % L_slice == 0, H % L_slice == 0, m <= T//2.
    seq_len, L_slice, H, m = 16, 4, 16, 4
    b, d, Ns = 2, 8, 6
    n = seq_len // L_slice
    Fdim = n * 6                                   # input_dim = seq_len//L_slice * 6

    key = jax.random.PRNGKey(0)
    ks = jax.random.split(key, 12)
    scale = 0.1
    params = (
        scale * jax.random.normal(ks[0], (H, seq_len), jnp.float32),   # backbone W (out,in)
        scale * jax.random.normal(ks[1], (H, 1), jnp.float32),         # backbone bias
        scale * jax.random.normal(ks[2], (Fdim, Fdim), jnp.float32),   # mlp_u W1
        scale * jax.random.normal(ks[3], (Fdim, 1), jnp.float32),      # mlp_u b1
        scale * jax.random.normal(ks[4], (H, Fdim), jnp.float32),      # mlp_u W2
        scale * jax.random.normal(ks[5], (H, 1), jnp.float32),         # mlp_u b2
        scale * jax.random.normal(ks[6], (Fdim, Fdim), jnp.float32),   # mlp_sigma W1
        scale * jax.random.normal(ks[7], (Fdim, 1), jnp.float32),      # mlp_sigma b1
        scale * jax.random.normal(ks[8], (H, Fdim), jnp.float32),      # mlp_sigma W2
        scale * jax.random.normal(ks[9], (H, 1), jnp.float32),         # mlp_sigma b2
    )
    x_input = jax.random.normal(ks[10], (b, seq_len, d), jnp.float32)
    trainset = jax.random.normal(ks[11], (Ns, seq_len, d), jnp.float32)

    fwd = jax.jit(functools.partial(rand_forward, seq_len=seq_len,
                                    L_slice=L_slice, H=H, m=m))
    y_out = fwd(params, x_input, trainset)
    jax.block_until_ready(y_out)
    assert y_out.shape == (b, H, d) and y_out.dtype == jnp.float32
    print("KERNEL_OK")
</pallas_src>

<mosaic_0001>
module attributes {stable_mosaic.version = 11 : i64} {
  func.func @rand_kernel(%arg0: i32, %arg1: memref<1x16x128xf32, #tpu.memory_space<vmem>>, %arg2: memref<1x16x128xf32, #tpu.memory_space<vmem>>, %arg3: memref<16x16xbf16, #tpu.memory_space<vmem>>, %arg4: memref<16x128xf32, #tpu.memory_space<vmem>>, %arg5: memref<4x16xf32, #tpu.memory_space<vmem>>, %arg6: memref<16x4xf32, #tpu.memory_space<vmem>>, %arg7: memref<48x24xbf16, #tpu.memory_space<vmem>>, %arg8: memref<48x128xf32, #tpu.memory_space<vmem>>, %arg9: memref<32x48xbf16, #tpu.memory_space<vmem>>, %arg10: memref<32x128xf32, #tpu.memory_space<vmem>>, %arg11: memref<1x16x128xf32, #tpu.memory_space<vmem>>, %arg12: memref<24x128xf32, #tpu.memory_space<vmem>>) attributes {dimension_semantics = [#tpu.dimension_semantics<parallel>], iteration_bounds = array<i64: 1>, scalar_prefetch = 0 : i64, scratch_operands = 1 : i64, tpu.core_type = #tpu.core_type<tc>, window_params = [{transform_indices = @transform_0, window_bounds = array<i64: 1, 16, 128>}, {transform_indices = @transform_1, window_bounds = array<i64: 1, 16, 128>}, {pipeline_mode = #tpu.pipeline_mode<synchronous>, transform_indices = @transform_2, window_bounds = array<i64: 16, 16>}, {pipeline_mode = #tpu.pipeline_mode<synchronous>, transform_indices = @transform_3, window_bounds = array<i64: 16, 128>}, {pipeline_mode = #tpu.pipeline_mode<synchronous>, transform_indices = @transform_4, window_bounds = array<i64: 4, 16>}, {pipeline_mode = #tpu.pipeline_mode<synchronous>, transform_indices = @transform_5, window_bounds = array<i64: 16, 4>}, {pipeline_mode = #tpu.pipeline_mode<synchronous>, transform_indices = @transform_6, window_bounds = array<i64: 48, 24>}, {pipeline_mode = #tpu.pipeline_mode<synchronous>, transform_indices = @transform_7, window_bounds = array<i64: 48, 128>}, {pipeline_mode = #tpu.pipeline_mode<synchronous>, transform_indices = @transform_8, window_bounds = array<i64: 32, 48>}, {pipeline_mode = #tpu.pipeline_mode<synchronous>, transform_indices = @transform_9, window_bounds = array<i64: 32, 128>}, {transform_indices = @transform_10, window_bounds = array<i64: 1, 16, 128>}]} {
    %c0 = arith.constant 0 : index
    %c0_0 = arith.constant 0 : index
    %c0_1 = arith.constant 0 : index
    %0 = vector.load %arg1[%c0, %c0_0, %c0_1] : memref<1x16x128xf32, #tpu.memory_space<vmem>>, vector<1x16x128xf32>
    %1 = vector.shape_cast %0 : vector<1x16x128xf32> to vector<16x128xf32>
    %c0_2 = arith.constant 0 : index
    %c0_3 = arith.constant 0 : index
    %c0_4 = arith.constant 0 : index
    %2 = vector.load %arg2[%c0_2, %c0_3, %c0_4] : memref<1x16x128xf32, #tpu.memory_space<vmem>>, vector<1x16x128xf32>
    %3 = vector.shape_cast %2 : vector<1x16x128xf32> to vector<16x128xf32>
    %cst = arith.constant dense<0.000000e+00> : vector<128xf32>
    %4 = vector.multi_reduction <add>, %1, %cst [0] : vector<16x128xf32> to vector<128xf32>
    %5 = vector.shape_cast %4 : vector<128xf32> to vector<1x128xf32>
    %cst_5 = arith.constant 1.600000e+01 : f32
    %6 = vector.broadcast %cst_5 : f32 to vector<1x128xf32>
    %7 = arith.divf %5, %6 : vector<1x128xf32>
    %8 = vector.broadcast %7 : vector<1x128xf32> to vector<16x128xf32>
    %9 = arith.subf %1, %8 : vector<16x128xf32>
    %10 = arith.mulf %9, %9 : vector<16x128xf32>
    %cst_6 = arith.constant dense<0.000000e+00> : vector<128xf32>
    %11 = vector.multi_reduction <add>, %10, %cst_6 [0] : vector<16x128xf32> to vector<128xf32>
    %12 = vector.shape_cast %11 : vector<128xf32> to vector<1x128xf32>
    %cst_7 = arith.constant 1.600000e+01 : f32
    %13 = vector.broadcast %cst_7 : f32 to vector<1x128xf32>
    %14 = arith.divf %12, %13 : vector<1x128xf32>
    %15 = vector.broadcast %7 : vector<1x128xf32> to vector<16x128xf32>
    %16 = arith.subf %1, %15 : vector<16x128xf32>
    %17 = math.rsqrt %14 : vector<1x128xf32>
    %18 = vector.broadcast %17 : vector<1x128xf32> to vector<16x128xf32>
    %19 = arith.mulf %16, %18 : vector<16x128xf32>
    %c0_8 = arith.constant 0 : index
    %c0_9 = arith.constant 0 : index
    %20 = vector.load %arg3[%c0_8, %c0_9] : memref<16x16xbf16, #tpu.memory_space<vmem>>, vector<16x16xbf16>
    %21 = arith.truncf %19 : vector<16x128xf32> to vector<16x128xbf16>
    %cst_10 = arith.constant dense<0.000000e+00> : vector<16x128xf32>
    %22 = tpu.matmul %20, %21, %cst_10 {dimension_numbers = #tpu.dot_dimension_numbers<[1], [0], [0], [1], [0, 0, 1, 1], [], []>} : vector<16x16xbf16>, vector<16x128xbf16>, vector<16x128xf32> -> vector<16x128xf32>
    %c0_11 = arith.constant 0 : index
    %c0_12 = arith.constant 0 : index
    %23 = vector.load %arg4[%c0_11, %c0_12] : memref<16x128xf32, #tpu.memory_space<vmem>>, vector<16x128xf32>
    %24 = arith.addf %22, %23 : vector<16x128xf32>
    %c0_13 = arith.constant 0 : index
    %c0_14 = arith.constant 0 : index
    %25 = vector.load %arg5[%c0_13, %c0_14] : memref<4x16xf32, #tpu.memory_space<vmem>>, vector<4x16xf32>
    %c0_15 = arith.constant 0 : index
    %c0_16 = arith.constant 0 : index
    %26 = vector.load %arg6[%c0_15, %c0_16] : memref<16x4xf32, #tpu.memory_space<vmem>>, vector<16x4xf32>
    %cst_17 = arith.constant dense<0.000000e+00> : vector<4x128xf32>
    %27 = tpu.matmul %25, %1, %cst_17 {dimension_numbers = #tpu.dot_dimension_numbers<[1], [0], [0], [1], [0, 0, 1, 1], [], []>} : vector<4x16xf32>, vector<16x128xf32>, vector<4x128xf32> -> vector<4x128xf32>
    %cst_18 = arith.constant dense<0.000000e+00> : vector<4x128xf32>
    %28 = tpu.matmul %25, %3, %cst_18 {dimension_numbers = #tpu.dot_dimension_numbers<[1], [0], [0], [1], [0, 0, 1, 1], [], []>} : vector<4x16xf32>, vector<16x128xf32>, vector<4x128xf32> -> vector<4x128xf32>
    %29 = arith.subf %27, %28 : vector<4x128xf32>
    %cst_19 = arith.constant dense<0.000000e+00> : vector<16x128xf32>
    %30 = tpu.matmul %26, %27, %cst_19 {dimension_numbers = #tpu.dot_dimension_numbers<[1], [0], [0], [1], [0, 0, 1, 1], [], []>} : vector<16x4xf32>, vector<4x128xf32>, vector<16x128xf32> -> vector<16x128xf32>
    %cst_20 = arith.constant dense<0.000000e+00> : vector<16x128xf32>
    %31 = tpu.matmul %26, %28, %cst_20 {dimension_numbers = #tpu.dot_dimension_numbers<[1], [0], [0], [1], [0, 0, 1, 1], [], []>} : vector<16x4xf32>, vector<4x128xf32>, vector<16x128xf32> -> vector<16x128xf32>
    %32 = arith.subf %1, %30 : vector<16x128xf32>
    %33 = arith.subf %3, %31 : vector<16x128xf32>
    %34 = arith.subf %32, %33 : vector<16x128xf32>
    %35 = arith.mulf %32, %32 : vector<16x128xf32>
    %cst_21 = arith.constant dense<0.000000e+00> : vector<4x128xf32>
    %36 = tpu.matmul %25, %35, %cst_21 {dimension_numbers = #tpu.dot_dimension_numbers<[1], [0], [0], [1], [0, 0, 1, 1], [], []>} : vector<4x16xf32>, vector<16x128xf32>, vector<4x128xf32> -> vector<4x128xf32>
    %37 = arith.mulf %33, %33 : vector<16x128xf32>
    %cst_22 = arith.constant dense<0.000000e+00> : vector<4x128xf32>
    %38 = tpu.matmul %25, %37, %cst_22 {dimension_numbers = #tpu.dot_dimension_numbers<[1], [0], [0], [1], [0, 0, 1, 1], [], []>} : vector<4x16xf32>, vector<16x128xf32>, vector<4x128xf32> -> vector<4x128xf32>
    %39 = arith.mulf %34, %34 : vector<16x128xf32>
    %cst_23 = arith.constant dense<0.000000e+00> : vector<4x128xf32>
    %40 = tpu.matmul %25, %39, %cst_23 {dimension_numbers = #tpu.dot_dimension_numbers<[1], [0], [0], [1], [0, 0, 1, 1], [], []>} : vector<4x16xf32>, vector<16x128xf32>, vector<4x128xf32> -> vector<4x128xf32>
    %c0_24 = arith.constant 0 : index
    %c0_25 = arith.constant 0 : index
    %41 = vector.load %arg12[%c0_24, %c0_25] : memref<24x128xf32, #tpu.memory_space<vmem>>, vector<4x128xf32>
    tpu.vector_store %arg12[%c0_24, %c0_25], %27 {strides = array<i32>} : memref<24x128xf32, #tpu.memory_space<vmem>>, vector<4x128xf32>,
    %c4 = arith.constant 4 : index
    %c0_26 = arith.constant 0 : index
    %42 = vector.load %arg12[%c4, %c0_26] : memref<24x128xf32, #tpu.memory_space<vmem>>, vector<4x128xf32>
    tpu.vector_store %arg12[%c4, %c0_26], %28 {strides = array<i32>} : memref<24x128xf32, #tpu.memory_space<vmem>>, vector<4x128xf32>,
    %c8 = arith.constant 8 : index
    %c0_27 = arith.constant 0 : index
    %43 = vector.load %arg12[%c8, %c0_27] : memref<24x128xf32, #tpu.memory_space<vmem>>, vector<4x128xf32>
    tpu.vector_store %arg12[%c8, %c0_27], %29 {strides = array<i32>} : memref<24x128xf32, #tpu.memory_space<vmem>>, vector<4x128xf32>,
    %c12 = arith.constant 12 : index
    %c0_28 = arith.constant 0 : index
    %44 = vector.load %arg12[%c12, %c0_28] : memref<24x128xf32, #tpu.memory_space<vmem>>, vector<4x128xf32>
    tpu.vector_store %arg12[%c12, %c0_28], %36 {strides = array<i32>} : memref<24x128xf32, #tpu.memory_space<vmem>>, vector<4x128xf32>,
    %c16 = arith.constant 16 : index
    %c0_29 = arith.constant 0 : index
    %45 = vector.load %arg12[%c16, %c0_29] : memref<24x128xf32, #tpu.memory_space<vmem>>, vector<4x128xf32>
    tpu.vector_store %arg12[%c16, %c0_29], %38 {strides = array<i32>} : memref<24x128xf32, #tpu.memory_space<vmem>>, vector<4x128xf32>,
    %c20 = arith.constant 20 : index
    %c0_30 = arith.constant 0 : index
    %46 = vector.load %arg12[%c20, %c0_30] : memref<24x128xf32, #tpu.memory_space<vmem>>, vector<4x128xf32>
    tpu.vector_store %arg12[%c20, %c0_30], %40 {strides = array<i32>} : memref<24x128xf32, #tpu.memory_space<vmem>>, vector<4x128xf32>,
    %c0_31 = arith.constant 0 : index
    %c0_32 = arith.constant 0 : index
    %47 = vector.load %arg12[%c0_31, %c0_32] : memref<24x128xf32, #tpu.memory_space<vmem>>, vector<24x128xf32>
    %48 = arith.truncf %47 : vector<24x128xf32> to vector<24x128xbf16>
    %c0_33 = arith.constant 0 : index
    %c0_34 = arith.constant 0 : index
    %49 = vector.load %arg7[%c0_33, %c0_34] : memref<48x24xbf16, #tpu.memory_space<vmem>>, vector<48x24xbf16>
    %cst_35 = arith.constant dense<0.000000e+00> : vector<48x128xf32>
    %50 = tpu.matmul %49, %48, %cst_35 {dimension_numbers = #tpu.dot_dimension_numbers<[1], [0], [0], [1], [0, 0, 1, 1], [], []>} : vector<48x24xbf16>, vector<24x128xbf16>, vector<48x128xf32> -> vector<48x128xf32>
    %c0_36 = arith.constant 0 : index
    %c0_37 = arith.constant 0 : index
    %51 = vector.load %arg8[%c0_36, %c0_37] : memref<48x128xf32, #tpu.memory_space<vmem>>, vector<48x128xf32>
    %52 = arith.addf %50, %51 : vector<48x128xf32>
    %cst_38 = arith.constant 5.000000e-01 : f32
    %53 = vector.broadcast %cst_38 : f32 to vector<48x128xf32>
    %54 = arith.mulf %53, %52 : vector<48x128xf32>
    %cst_39 = arith.constant 0.707106769 : f32
    %55 = vector.broadcast %cst_39 : f32 to vector<48x128xf32>
    %56 = arith.mulf %52, %55 : vector<48x128xf32>
    %57 = math.absf %56 : vector<48x128xf32>
    %cst_40 = arith.constant 0.327591091 : f32
    %58 = vector.broadcast %cst_40 : f32 to vector<48x128xf32>
    %59 = arith.mulf %58, %57 : vector<48x128xf32>
    %cst_41 = arith.constant 1.000000e+00 : f32
    %60 = vector.broadcast %cst_41 : f32 to vector<48x128xf32>
    %61 = arith.addf %60, %59 : vector<48x128xf32>
    %62 = tpu.reciprocal %61 {approx = true} : vector<48x128xf32> -> vector<48x128xf32>
    %cst_42 = arith.constant 1.06140542 : f32
    %63 = vector.broadcast %cst_42 : f32 to vector<48x128xf32>
    %64 = arith.mulf %63, %62 : vector<48x128xf32>
    %cst_43 = arith.constant -1.45315206 : f32
    %65 = vector.broadcast %cst_43 : f32 to vector<48x128xf32>
    %66 = arith.addf %64, %65 : vector<48x128xf32>
    %67 = arith.mulf %66, %62 : vector<48x128xf32>
    %cst_44 = arith.constant 1.42141378 : f32
    %68 = vector.broadcast %cst_44 : f32 to vector<48x128xf32>
    %69 = arith.addf %67, %68 : vector<48x128xf32>
    %70 = arith.mulf %69, %62 : vector<48x128xf32>
    %cst_45 = arith.constant -0.284496725 : f32
    %71 = vector.broadcast %cst_45 : f32 to vector<48x128xf32>
    %72 = arith.addf %70, %71 : vector<48x128xf32>
    %73 = arith.mulf %72, %62 : vector<48x128xf32>
    %cst_46 = arith.constant 0.254829586 : f32
    %74 = vector.broadcast %cst_46 : f32 to vector<48x128xf32>
    %75 = arith.addf %73, %74 : vector<48x128xf32>
    %76 = arith.mulf %75, %62 : vector<48x128xf32>
    %cst_47 = arith.constant 0.000000e+00 : f32
    %77 = vector.broadcast %cst_47 : f32 to vector<48x128xf32>
    %78 = arith.subf %77, %57 : vector<48x128xf32>
    %79 = arith.mulf %78, %57 : vector<48x128xf32>
    %80 = math.exp %79 : vector<48x128xf32>
    %81 = arith.mulf %76, %80 : vector<48x128xf32>
    %cst_48 = arith.constant 1.000000e+00 : f32
    %82 = vector.broadcast %cst_48 : f32 to vector<48x128xf32>
    %83 = arith.subf %82, %81 : vector<48x128xf32>
    %cst_49 = arith.constant 0.000000e+00 : f32
    %84 = vector.broadcast %cst_49 : f32 to vector<48x128xf32>
    %85 = arith.cmpf oge, %56, %84 : vector<48x128xf32>
    %cst_50 = arith.constant 0.000000e+00 : f32
    %86 = vector.broadcast %cst_50 : f32 to vector<48x128xf32>
    %87 = arith.subf %86, %83 : vector<48x128xf32>
    %88 = arith.select %85, %83, %87 : vector<48x128xi1>, vector<48x128xf32>
    %cst_51 = arith.constant 1.000000e+00 : f32
    %89 = vector.broadcast %cst_51 : f32 to vector<48x128xf32>
    %90 = arith.addf %89, %88 : vector<48x128xf32>
    %91 = arith.mulf %54, %90 : vector<48x128xf32>
    %c0_52 = arith.constant 0 : index
    %c0_53 = arith.constant 0 : index
    %92 = vector.load %arg9[%c0_52, %c0_53] : memref<32x48xbf16, #tpu.memory_space<vmem>>, vector<32x48xbf16>
    %93 = arith.truncf %91 : vector<48x128xf32> to vector<48x128xbf16>
    %cst_54 = arith.constant dense<0.000000e+00> : vector<32x128xf32>
    %94 = tpu.matmul %92, %93, %cst_54 {dimension_numbers = #tpu.dot_dimension_numbers<[1], [0], [0], [1], [0, 0, 1, 1], [], []>} : vector<32x48xbf16>, vector<48x128xbf16>, vector<32x128xf32> -> vector<32x128xf32>
    %c0_55 = arith.constant 0 : index
    %c0_56 = arith.constant 0 : index
    %95 = vector.load %arg10[%c0_55, %c0_56] : memref<32x128xf32, #tpu.memory_space<vmem>>, vector<32x128xf32>
    %96 = arith.addf %94, %95 : vector<32x128xf32>
    %97 = vector.extract_strided_slice %96 {offsets = [0, 0], sizes = [16, 128], strides = [1, 1]} : vector<32x128xf32> to vector<16x128xf32>
    %98 = vector.extract_strided_slice %96 {offsets = [16, 0], sizes = [16, 128], strides = [1, 1]} : vector<32x128xf32> to vector<16x128xf32>
    %99 = arith.mulf %24, %98 : vector<16x128xf32>
    %100 = arith.addf %99, %97 : vector<16x128xf32>
    %c0_57 = arith.constant 0 : index
    %c0_58 = arith.constant 0 : index
    %c0_59 = arith.constant 0 : index
    %101 = vector.load %arg11[%c0_57, %c0_58, %c0_59] : memref<1x16x128xf32, #tpu.memory_space<vmem>>, vector<1x16x128xf32>
    %102 = vector.shape_cast %101 : vector<1x16x128xf32> to vector<16x128xf32>
    %103 = vector.shape_cast %100 : vector<16x128xf32> to vector<1x16x128xf32>
    tpu.vector_store %arg11[%c0_57, %c0_58, %c0_59], %103 {strides = array<i32>} : memref<1x16x128xf32, #tpu.memory_space<vmem>>, vector<1x16x128xf32>,
    return
  }
  func.func @transform_0(%arg0: i32) -> (i32, i32, i32) {
    %c0_i32 = arith.constant 0 : i32
    %c0_i32_0 = arith.constant 0 : i32
    %c0_i32_1 = arith.constant 0 : i32
    return %arg0, %c0_i32, %c0_i32_0 : i32, i32, i32
  }
  func.func @transform_1(%arg0: i32) -> (i32, i32, i32) {
    %c0_i32 = arith.constant 0 : i32
    %c0_i32_0 = arith.constant 0 : i32
    %c0_i32_1 = arith.constant 0 : i32
    return %arg0, %c0_i32, %c0_i32_0 : i32, i32, i32
  }
  func.func @transform_2(%arg0: i32) -> (i32, i32) {
    %c0_i32 = arith.constant 0 : i32
    %c0_i32_0 = arith.constant 0 : i32
    %c0_i32_1 = arith.constant 0 : i32
    return %c0_i32, %c0_i32_0 : i32, i32
  }
  func.func @transform_3(%arg0: i32) -> (i32, i32) {
    %c0_i32 = arith.constant 0 : i32
    %c0_i32_0 = arith.constant 0 : i32
    %c0_i32_1 = arith.constant 0 : i32
    return %c0_i32, %c0_i32_0 : i32, i32
  }
  func.func @transform_4(%arg0: i32) -> (i32, i32) {
    %c0_i32 = arith.constant 0 : i32
    %c0_i32_0 = arith.constant 0 : i32
    %c0_i32_1 = arith.constant 0 : i32
    return %c0_i32, %c0_i32_0 : i32, i32
  }
  func.func @transform_5(%arg0: i32) -> (i32, i32) {
    %c0_i32 = arith.constant 0 : i32
    %c0_i32_0 = arith.constant 0 : i32
    %c0_i32_1 = arith.constant 0 : i32
    return %c0_i32, %c0_i32_0 : i32, i32
  }
  func.func @transform_6(%arg0: i32) -> (i32, i32) {
    %c0_i32 = arith.constant 0 : i32
    %c0_i32_0 = arith.constant 0 : i32
    %c0_i32_1 = arith.constant 0 : i32
    return %c0_i32, %c0_i32_0 : i32, i32
  }
  func.func @transform_7(%arg0: i32) -> (i32, i32) {
    %c0_i32 = arith.constant 0 : i32
    %c0_i32_0 = arith.constant 0 : i32
    %c0_i32_1 = arith.constant 0 : i32
    return %c0_i32, %c0_i32_0 : i32, i32
  }
  func.func @transform_8(%arg0: i32) -> (i32, i32) {
    %c0_i32 = arith.constant 0 : i32
    %c0_i32_0 = arith.constant 0 : i32
    %c0_i32_1 = arith.constant 0 : i32
    return %c0_i32, %c0_i32_0 : i32, i32
  }
  func.func @transform_9(%arg0: i32) -> (i32, i32) {
    %c0_i32 = arith.constant 0 : i32
    %c0_i32_0 = arith.constant 0 : i32
    %c0_i32_1 = arith.constant 0 : i32
    return %c0_i32, %c0_i32_0 : i32, i32
  }
  func.func @transform_10(%arg0: i32) -> (i32, i32, i32) {
    %c0_i32 = arith.constant 0 : i32
    %c0_i32_0 = arith.constant 0 : i32
    %c0_i32_1 = arith.constant 0 : i32
    return %arg0, %c0_i32, %c0_i32_0 : i32, i32, i32
  }
}

</mosaic_0001>

<bundles_post_ra>
// kernel: rand_forward.1
= control target key start
LH: loop header
LB: loop body
LE: loop exit
PB: predicated region body
PF: predicated region fallthrough
CT: control target
= control target key end

     0   :  { %v1170_v0 = vmov 0.0   ;;  %vm1171_vm0 = vmmov 0   ;;  %vm74_vm1 = vcmask 130048   ;;  %vm266_vm2 = vcmask 31744   ;;  %s1456_s0 = inlined_call_operand.vmem [shape: f32[1,16,128], index: 0, kind: input, shape index: {}]   ;;  %s1457_s2 = inlined_call_operand.vmem [shape: bf16[16,16], index: 2, kind: input, shape index: {}]   ;;  %s1458_s1 = inlined_call_operand.vmem [shape: f32[1,16,128], index: 1, kind: input, shape index: {}]   ;;  %s1459_s4 = inlined_call_operand.vmem [shape: f32[4,16], index: 4, kind: input, shape index: {}]   ;;  %s1460_s5 = inlined_call_operand.vmem [shape: f32[16,4], index: 5, kind: input, shape index: {}]   ;;  %s1461_s6 = inlined_call_operand.vmem [shape: bf16[48,24], index: 6, kind: input, shape index: {}]   ;;  %s1462_s8 = inlined_call_operand.vmem [shape: bf16[32,48], index: 8, kind: input, shape index: {}]   ;;  %s1463_s7 = inlined_call_operand.vmem [shape: f32[48,128], index: 7, kind: input, shape index: {}]   ;;  %s1464_s3 = inlined_call_operand.vmem [shape: f32[16,128], index: 3, kind: input, shape index: {}]   ;;  %s1465_s9 = inlined_call_operand.vmem [shape: f32[32,128], index: 9, kind: input, shape index: {}]   ;;  %s1466_s10 = inlined_call_operand.vmem [shape: f32[1,16,128], index: 10, kind: output, shape index: {}]  }
   0x1   :  { %1059 = vmatprep.subr.bf16.mxu0 %v1170_v0  ;;  %v1231_v1 = vld [vmem:[%s1456_s0] sm:$0xff]  ;;  %v1236_v2 = vld [vmem:[%s1456_s0 + $0x8] sm:$0xff]  ;;  %1061 = vmatprep.mubr.msk.bf16.mxu0 %vm1171_vm0, %v1170_v0  ;;  %vm273_vm3 = vcmask 1043456   ;;  %vm690_vm4 = vcmask 195584   ;;  %vm937_vm5 = vcmask 392192  }
   0x2   :  { %v40_v3 = vadd.f32 %v1236_v2, %v1231_v1  ;;  %1072 = vmatprep.subr.mxu1 %v1170_v0  ;;  %v1246_v4 = vld [vmem:[%s1458_s1 + $0x8] sm:$0xff]  ;;  %1076 = vmatprep.mubr.msk.f32.mxu1 %vm1171_vm0, %v1170_v0  ;;  %v1254_v5 = vld [vmem:[%s1458_s1] sm:$0xff] }
   0x3   :  { %1073 = vmatpush3.msra.mxu1 %v1246_v4  ;;  %v1259_v6 = vld [vmem:[%s1459_s4] sm:$0xf]  ;;  %v121_v33 = vld [vmem:[%s1460_s5 + $0x8] sm:$0xff] }
   0x4   :  { %v41_v7 = vrot.slane %v40_v3, 4  ;;  %1074 = vmatprep.subr.mxu1 %v1170_v0  ;;  %v1138_v30 = vld [vmem:[%s1457_s2] sm:$0xff]  }
   0x5   :  { %1075 = vmatpush3.msra.mxu1 %v1254_v5  ;;  %v120_v31 = vld [vmem:[%s1460_s5] sm:$0xff] }
   0x6   :  { %v42_v8 = vadd.f32 %v41_v7, %v40_v3  ;;  %1077 = vmatmul.mubr.msk.f32.vlgmr.msra.gmra.mxu1 %vm74_vm1, %v1259_v6 }
   0x7   :  { %1086 = vmatprep.mubr.msk.f32.mxu1 %vm266_vm2, %v120_v31 }
   0x8   :  { %v43_v9 = vrot.slane %v42_v8, 2 }
   0xa   :  { %v44_v10 = vadd.f32 %v43_v9, %v42_v8  ;;  %v1140_v8 = vld [vmem:[%s1461_s6 + $0x8] sm:$0xff]   ;;  %v1141_v9 = vld [vmem:[%s1461_s6 + $0x10] sm:$0xff]  }
   0xc   :  { %v45_v11 = vrot.slane %v44_v10, 1 }
   0xe   :  { %v46_v12 = vadd.f32 %v45_v11, %v44_v10  ;;  %v1142_v10 = vld [vmem:[%s1462_s8] sm:$0xff]  }
   0xf   :  { %v669_v11 = vld [vmem:[%s1463_s7] sm:$0xff] }
  0x10   :  { %v48_v13 = vmul.f32 0.0625, %v46_v12 }
  0x12   :  { %v49_v14 = vsub.f32 %v1231_v1, %v48_v13  ;;  %v50_v15 = vsub.f32 %v1236_v2, %v48_v13 }
  0x14   :  { %v51_v16 = vmul.f32 %v49_v14, %v49_v14  ;;  %v52_v17 = vmul.f32 %v50_v15, %v50_v15 }
  0x16   :  { %v53_v18 = vadd.f32 %v52_v17, %v51_v16 }
  0x18   :  { %v54_v19 = vrot.slane %v53_v18, 4 }
  0x1a   :  { %v55_v20 = vadd.f32 %v54_v19, %v53_v18 }
  0x1c   :  { %v56_v21 = vrot.slane %v55_v20, 2 }
  0x1e   :  { %v57_v22 = vadd.f32 %v56_v21, %v55_v20 }
  0x20   :  { %v58_v23 = vrot.slane %v57_v22, 1 }
  0x22   :  { %v59_v24 = vadd.f32 %v58_v23, %v57_v22  ;;  %v671_v22 = vld [vmem:[%s1463_s7 + $0x10] sm:$0xff] }
  0x24   :  { %v60_v25 = vmul.f32 0.0625, %v59_v24 }
  0x26   :  { %1144 = vrsqrt.f32 %v60_v25 }
  0x33   :  { %v1145_v26 = vpop.eup %1144 }
  0x34   :  { %v62_v27 = vmul.f32 %v1145_v26, %v49_v14  ;;  %v63_v28 = vmul.f32 %v1145_v26, %v50_v15  ;;  %v670_v14 = vld [vmem:[%s1463_s7 + $0x8] sm:$0xff] }
  0x36   :  { %v66_v29 = vpack.c.bf16 %v63_v28, %v62_v27  ;;  %v672_v28 = vld [vmem:[%s1463_s7 + $0x18] sm:$0xff] }
  0x38   :  { %1060 = vmatpush3.bf16.msra.mxu0 %v66_v29 }
  0x39   :  { %1065 = vmatprep.subr.mxu0 %v1170_v0 }
  0x3b   :  { %1062 = vmatmul.mubr.msk.bf16.vlgmr.msra.gmra.mxu0 %vm74_vm1, %v1138_v30 }
  0x3c   :  { %1066 = vmatpush3.msra.mxu0 %v1236_v2  ;;  %1069 = vmatprep.mubr.msk.f32.mxu0 %vm1171_vm0, %v1170_v0 }
  0x3d   :  { %1067 = vmatprep.subr.mxu0 %v1170_v0 }
  0x3e   :  { %1068 = vmatpush3.msra.mxu0 %v1231_v1 }
  0x43   :  { %1070 = vmatmul.mubr.msk.f32.vlgmr.msra.gmra.mxu0 %vm74_vm1, %v1259_v6 }
  0x44   :  { %1081 = vmatprep.mubr.msk.f32.mxu0 %vm266_vm2, %v120_v31 }
  0xc6   :  { %v261_v32 = vpop.f32.mrf.mxu1 }
  0xc7   :  { %653 = vst [vmem:[#allocation2 + $0x4] sm:$0xf] %v261_v32  ;;  %1084 = vmatprep.subr.msk.mxu1 %vm273_vm3, %v261_v32 }
  0xc8   :  { %v1078_v34 = vpop.f32.mrf.mxu1  ;;  %1085 = vmatpush3.msk.msra.mxu1 %vm273_vm3, %v261_v32 }
  0xc9   :  { %1087 = vmatmul.mubr.msk.f32.vlgmr.msra.gmra.mxu1 %vm266_vm2, %v121_v33  ;;  %1096 = vmatprep.subr.mxu1 %v1170_v0 }
  0xca   :  { %1100 = vmatprep.mubr.msk.f32.mxu1 %vm1171_vm0, %v1170_v0 }
  0xfb   :  { %v1293_v35 = vpop.f32.mrf.mxu0 }
  0xfd   :  { %v1063_v36 = vpop.f32.mrf.mxu0 }
  0xff   :  { %v1295_v37 = vpop.f32.mrf.mxu0 }
 0x101   :  { %v1064_v38 = vpop.f32.mrf.mxu0 }
 0x102   :  { %v673_v38 = vld [vmem:[%s1463_s7 + $0x20] sm:$0xff] }
 0x103   :  { %v191_v39 = vpop.f32.mrf.mxu0 }
 0x104   :  { %652 = vst [vmem:[#allocation2] sm:$0xf] %v191_v39  ;;  %v265_v40 = vsub.f32 %v191_v39, %v261_v32  ;;  %1079 = vmatprep.subr.msk.mxu0 %vm273_vm3, %v191_v39 }
 0x105   :  { %v1071_v41 = vpop.f32.mrf.mxu0  ;;  %1080 = vmatpush3.msk.msra.mxu0 %vm273_vm3, %v191_v39 }
 0x106   :  { %654 = vst [vmem:[#allocation2 + $0x8] sm:$0xf] %v265_v40  ;;  %1082 = vmatmul.mubr.msk.f32.vlgmr.msra.gmra.mxu0 %vm266_vm2, %v121_v33  ;;  %1089 = vmatprep.subr.mxu0 %v1170_v0 }
 0x107   :  { %1093 = vmatprep.mubr.msk.f32.mxu0 %vm1171_vm0, %v1170_v0 }
 0x189   :  { %v1088_v42 = vpop.f32.mrf.mxu1 }
 0x18a   :  { %v433_v43 = vsub.f32 %v1246_v4, %v1088_v42 }
 0x18b   :  { %v421_v44 = vpop.f32.mrf.mxu1 }
 0x18c   :  { %v509_v45 = vmul.f32 %v433_v43, %v433_v43  ;;  %v432_v46 = vsub.f32 %v1254_v5, %v421_v44  ;;  %v658_v5 = vld [vmem:[#allocation2] sm:$0xff] }
 0x18e   :  { %v508_v47 = vmul.f32 %v432_v46, %v432_v46  ;;  %1097 = vmatpush3.msra.mxu1 %v509_v45 }
 0x18f   :  { %1098 = vmatprep.subr.mxu1 %v1170_v0 }
 0x190   :  { %1099 = vmatpush3.msra.mxu1 %v508_v47 }
 0x191   :  { %1101 = vmatmul.mubr.msk.f32.vlgmr.msra.gmra.mxu1 %vm74_vm1, %v1259_v6  ;;  %1110 = vmatprep.subr.bf16.mxu1 %v1170_v0 }
 0x192   :  { %1114 = vmatprep.mubr.msk.bf16.mxu1 %vm1171_vm0, %v1170_v0 }
 0x1c6   :  { %v1083_v48 = vpop.f32.mrf.mxu0 }
 0x1c7   :  { %v431_v49 = vsub.f32 %v1236_v2, %v1083_v48  ;;  %v674_v48 = vld [vmem:[%s1463_s7 + $0x28] sm:$0xff] }
 0x1c8   :  { %v343_v50 = vpop.f32.mrf.mxu0 }
 0x1c9   :  { %v437_v51 = vmul.f32 %v431_v49, %v431_v49  ;;  %v435_v52 = vsub.f32 %v431_v49, %v433_v43  ;;  %v430_v53 = vsub.f32 %v1231_v1, %v343_v50 }
 0x1cb   :  { %v436_v54 = vmul.f32 %v430_v53, %v430_v53  ;;  %v434_v55 = vsub.f32 %v430_v53, %v432_v46  ;;  %1090 = vmatpush3.msra.mxu0 %v437_v51  ;;  %v581_v56 = vmul.f32 %v435_v52, %v435_v52 }
 0x1cc   :  { %1091 = vmatprep.subr.mxu0 %v1170_v0 }
 0x1cd   :  { %1092 = vmatpush3.msra.mxu0 %v436_v54  ;;  %v580_v57 = vmul.f32 %v434_v55, %v434_v55 }
 0x1ce   :  { %1094 = vmatmul.mubr.msk.f32.vlgmr.msra.gmra.mxu0 %vm74_vm1, %v1259_v6  ;;  %1103 = vmatprep.subr.mxu0 %v1170_v0 }
 0x1cf   :  { %1104 = vmatpush3.msra.mxu0 %v581_v56  ;;  %1107 = vmatprep.mubr.msk.f32.mxu0 %vm1171_vm0, %v1170_v0 }
 0x1d0   :  { %1105 = vmatprep.subr.mxu0 %v1170_v0 }
 0x1d1   :  { %1106 = vmatpush3.msra.mxu0 %v580_v57 }
 0x1d2   :  { %1108 = vmatmul.mubr.msk.f32.vlgmr.msra.gmra.mxu0 %vm74_vm1, %v1259_v6  ;;  %v1139_v6 = vld [vmem:[%s1461_s6] sm:$0xff]  }
 0x1d3   :  { %1132 = vmatprep.mubr.msk.bf16.mxu0 %vm937_vm5, %v1142_v10 }
 0x251   :  { %v576_v58 = vpop.f32.mrf.mxu1 }
 0x252   :  { %656 = vst [vmem:[#allocation2 + $0x10] sm:$0xf] %v576_v58 }
 0x253   :  { %v1102_v59 = vpop.f32.mrf.mxu1 }
 0x28e   :  { %v504_v60 = vpop.f32.mrf.mxu0 }
 0x28f   :  { %655 = vst [vmem:[#allocation2 + $0xc] sm:$0xf] %v504_v60 }
 0x290   :  { %v1095_v61 = vpop.f32.mrf.mxu0 }
 0x292   :  { %v648_v62 = vpop.f32.mrf.mxu0 }
 0x293   :  { %657 = vst [vmem:[#allocation2 + $0x14] sm:$0xf] %v648_v62 }
 0x294   :  { %v1109_v63 = vpop.f32.mrf.mxu0 }
 0x296   :  { %v659_v4 = vld [vmem:[#allocation2 + $0x8] sm:$0xff] }
 0x297   :  { %v661_v7 = vpack.c.bf16 %v659_v4, %v658_v5 }
 0x29a   :  { %v660_v1 = vld [vmem:[#allocation2 + $0x10] sm:$0xff] }
 0x29b   :  { %v662_v2 = vpack.c.bf16 %v660_v1, %v660_v1 }
 0x29d   :  { %v701_v3 = vsel %vm273_vm3, %v662_v2, 0 }
 0x29e   :  { %1111 = vmatpush3.bf16.msra.mxu1 %v701_v3 }
 0x29f   :  { %1112 = vmatprep.subr.bf16.mxu1 %v1170_v0 }
 0x2a2   :  { %1113 = vmatpush3.bf16.msra.mxu1 %v661_v7 }
 0x2a5   :  { %1115 = vmatmul.mubr.msk.bf16.vlgmr.msra.gmra.mxu1 %vm690_vm4, %v1139_v6 }
 0x2a6   :  { %1118 = vmatprep.mubr.msk.bf16.mxu1 %vm1171_vm0, %v1170_v0 }
 0x2ad   :  { %1119 = vmatmul.mubr.msk.bf16.gmra.mxu1 %vm690_vm4, %v1140_v8 }
 0x2ae   :  { %1122 = vmatprep.mubr.msk.bf16.mxu1 %vm1171_vm0, %v1170_v0 }
 0x2b5   :  { %1123 = vmatmul.mubr.msk.bf16.gmra.mxu1 %vm690_vm4, %v1141_v9 }
 0x365   :  { %v737_v12 = vpop.f32.mrf.mxu1 }
 0x366   :  { %v1344_v13 = vadd.f32 %v737_v12, %v669_v11 }
 0x367   :  { %v1116_v0 = vpop.f32.mrf.mxu1 }
 0x368   :  { %v1350_v15 = vmul.f32 0.70710677, %v1344_v13 }
 0x369   :  { %v740_v16 = vpop.f32.mrf.mxu1 }
 0x36a   :  { %v1353_v17 = vand.u32 2147483647, %v1350_v15  ;;  %v1355_v18 = vadd.f32 %v740_v16, %v670_v14  ;;  %vm886_vm11 = vcmp.ge.f32.partialorder %v1350_v15, 0.0 }
 0x36b   :  { %v1117_v19 = vpop.f32.mrf.mxu1 }
 0x36c   :  { %v778_v20 = vmul.f32 0.3275911, %v1353_v17  ;;  %v1359_v21 = vmul.f32 0.70710677, %v1355_v18  ;;  %v850_v4 = vsub.f32 0.0, %v1353_v17  ;;  %v761_v15 = vmul.f32 0.5, %v1355_v18 }
 0x36d   :  { %v745_v23 = vpop.f32.mrf.mxu1  ;;  %v925_v18 = vld [vmem:[%s1465_s9 + $0x10] sm:$0xff] }
 0x36e   :  { %v784_v24 = vadd.f32 1.0, %v778_v20  ;;  %v773_v25 = vand.u32 2147483647, %v1359_v21  ;;  %v1365_v26 = vadd.f32 %v745_v23, %v671_v22  ;;  %v856_v14 = vmul.f32 %v850_v4, %v1353_v17 }
 0x36f   :  { %v1120_v27 = vpop.f32.mrf.mxu1  ;;  %vm887_vm9 = vcmp.ge.f32.partialorder %v1359_v21, 0.0 }
 0x370   :  { %1146 = vrcp.f32 %v784_v24  ;;  %v779_v29 = vmul.f32 0.3275911, %v773_v25  ;;  %v1371_v30 = vmul.f32 0.70710677, %v1365_v26  ;;  %v851_v6 = vsub.f32 0.0, %v773_v25 }
 0x371   :  { %v748_v31 = vpop.f32.mrf.mxu1 }
 0x372   :  { %v785_v32 = vadd.f32 1.0, %v779_v29  ;;  %v1373_v33 = vadd.f32 %v748_v31, %v672_v28  ;;  %v774_v34 = vand.u32 2147483647, %v1371_v30  ;;  %v857_v22 = vmul.f32 %v851_v6, %v773_v25 }
 0x373   :  { %v1121_v36 = vpop.f32.mrf.mxu1  ;;  %vm888_vm8 = vcmp.ge.f32.partialorder %v1371_v30, 0.0 }
 0x374   :  { %1148 = vrcp.f32 %v785_v32  ;;  %v1380_v39 = vmul.f32 0.70710677, %v1373_v33  ;;  %v780_v40 = vmul.f32 0.3275911, %v774_v34  ;;  %v852_v2 = vsub.f32 0.0, %v774_v34 }
 0x375   :  { %v753_v41 = vpop.f32.mrf.mxu1 }
 0x376   :  { %v775_v42 = vand.u32 2147483647, %v1380_v39  ;;  %v1383_v43 = vadd.f32 %v753_v41, %v673_v38  ;;  %v786_v44 = vadd.f32 1.0, %v780_v40  ;;  %v858_v0 = vmul.f32 %v852_v2, %v774_v34 }
 0x377   :  { %v1124_v45 = vpop.f32.mrf.mxu1  ;;  %v862_v38 = vmul.f32 1.442695, %v856_v14  ;;  %vm889_vm6 = vcmp.ge.f32.partialorder %v1380_v39, 0.0 }
 0x378   :  { %v781_v46 = vmul.f32 0.3275911, %v775_v42  ;;  %v1386_v47 = vmul.f32 0.70710677, %v1383_v43  ;;  %1150 = vrcp.f32 %v786_v44  ;;  %v853_v1 = vsub.f32 0.0, %v775_v42 }
 0x379   :  { %v756_v49 = vpop.f32.mrf.mxu1  ;;  %v866_v32 = vmul.f32 1.442695, %v858_v0 }
 0x37a   :  { %v787_v50 = vadd.f32 1.0, %v781_v46  ;;  %v776_v51 = vand.u32 2147483647, %v1386_v47  ;;  %v1392_v52 = vadd.f32 %v756_v49, %v674_v48  ;;  %v859_v10 = vmul.f32 %v853_v1, %v775_v42 }
 0x37b   :  { %v1125_v53 = vpop.f32.mrf.mxu1  ;;  %v864_v42 = vmul.f32 1.442695, %v857_v22  ;;  %vm890_vm7 = vcmp.ge.f32.partialorder %v1386_v47, 0.0  ;;  %v763_v47 = vmul.f32 0.5, %v1373_v33  ;;  %v760_v33 = vmul.f32 0.5, %v1344_v13  ;;  %v67_v13 = vld [vmem:[%s1464_s3] sm:$0xff] }
 0x37c   :  { %1152 = vrcp.f32 %v787_v50  ;;  %v782_v54 = vmul.f32 0.3275911, %v776_v51  ;;  %v1397_v56 = vmul.f32 0.70710677, %v1392_v52  ;;  %v854_v11 = vsub.f32 0.0, %v776_v51 }
 0x37d   :  { %v1394_v55 = vpop.eup %1146  ;;  %v868_v27 = vmul.f32 1.442695, %v859_v10  ;;  %v765_v30 = vmul.f32 0.5, %v1392_v52 }
 0x37e   :  { %v796_v57 = vmul.f32 1.0614054, %v1394_v55  ;;  %v788_v58 = vadd.f32 1.0, %v782_v54  ;;  %v777_v59 = vand.u32 2147483647, %v1397_v56  ;;  %v860_v28 = vmul.f32 %v854_v11, %v776_v51 }
 0x37f   :  { %vm891_vm10 = vcmp.ge.f32.partialorder %v1397_v56, 0.0 }
 0x380   :  { %1154 = vrcp.f32 %v788_v58  ;;  %v802_v61 = vadd.f32 -1.4531521, %v796_v57  ;;  %v783_v62 = vmul.f32 0.3275911, %v777_v59  ;;  %v855_v36 = vsub.f32 0.0, %v777_v59 }
 0x381   :  { %v1401_v60 = vpop.eup %1148  ;;  %v870_v25 = vmul.f32 1.442695, %v860_v28 }
 0x382   :  { %v797_v63 = vmul.f32 1.0614054, %v1401_v60  ;;  %v789_v3 = vadd.f32 1.0, %v783_v62  ;;  %v808_v7 = vmul.f32 %v1394_v55, %v802_v61  ;;  %v861_v49 = vmul.f32 %v855_v36, %v777_v59 }
 0x384   :  { %v803_v5 = vadd.f32 -1.4531521, %v797_v63  ;;  %1156 = vrcp.f32 %v789_v3  ;;  %v814_v20 = vadd.f32 1.4214138, %v808_v7  ;;  %v872_v2 = vmul.f32 1.442695, %v861_v49 }
 0x385   :  { %v1151_v8 = vpop.eup %1150  ;;  %1158 = vpow2.f32 %v868_v27 }
 0x386   :  { %v809_v9 = vmul.f32 %v1401_v60, %v803_v5  ;;  %v798_v12 = vmul.f32 1.0614054, %v1151_v8  ;;  %v820_v34 = vmul.f32 %v1394_v55, %v814_v20  ;;  %1160 = vpow2.f32 %v866_v32 }
 0x387   :  { %1162 = vpow2.f32 %v862_v38 }
 0x388   :  { %v815_v16 = vadd.f32 1.4214138, %v809_v9  ;;  %v804_v23 = vadd.f32 -1.4531521, %v798_v12  ;;  %v826_v53 = vadd.f32 -0.28449672, %v820_v34  ;;  %1164 = vpow2.f32 %v864_v42 }
 0x389   :  { %v1153_v19 = vpop.eup %1152  ;;  %1166 = vpow2.f32 %v870_v25 }
 0x38a   :  { %v799_v24 = vmul.f32 1.0614054, %v1153_v19  ;;  %v821_v29 = vmul.f32 %v1401_v60, %v815_v16  ;;  %v810_v31 = vmul.f32 %v1151_v8, %v804_v23  ;;  %v832_v5 = vmul.f32 %v1394_v55, %v826_v53 }
 0x38b   :  { %1168 = vpow2.f32 %v872_v2 }
 0x38c   :  { %v805_v40 = vadd.f32 -1.4531521, %v799_v24  ;;  %v816_v17 = vadd.f32 1.4214138, %v810_v31  ;;  %v827_v46 = vadd.f32 -0.28449672, %v821_v29 }
 0x38d   :  { %v1155_v41 = vpop.eup %1154  ;;  %v838_v14 = vadd.f32 0.2548296, %v832_v5 }
 0x38e   :  { %v811_v44 = vmul.f32 %v1153_v19, %v805_v40  ;;  %v800_v45 = vmul.f32 1.0614054, %v1155_v41  ;;  %v822_v48 = vmul.f32 %v1151_v8, %v816_v17  ;;  %v833_v62 = vmul.f32 %v1401_v60, %v827_v46 }
 0x38f   :  { %v844_v38 = vmul.f32 %v1394_v55, %v838_v14 }
 0x390   :  { %v817_v50 = vadd.f32 1.4214138, %v811_v44  ;;  %v806_v51 = vadd.f32 -1.4531521, %v800_v45  ;;  %v828_v54 = vadd.f32 -0.28449672, %v822_v48 }
 0x391   :  { %v1157_v57 = vpop.eup %1156  ;;  %v839_v10 = vadd.f32 0.2548296, %v833_v62 }
 0x392   :  { %v823_v58 = vmul.f32 %v1153_v19, %v817_v50  ;;  %v812_v61 = vmul.f32 %v1155_v41, %v806_v51  ;;  %v834_v63 = vmul.f32 %v1151_v8, %v828_v54  ;;  %v801_v1 = vmul.f32 1.0614054, %v1157_v57  ;;  %v1159_v24 = vpop.eup %1158 }
 0x393   :  { %v845_v27 = vmul.f32 %v1401_v60, %v839_v10  ;;  %v1161_v29 = vpop.eup %1160 }
 0x394   :  { %v829_v3 = vadd.f32 -0.28449672, %v823_v58  ;;  %v818_v4 = vadd.f32 1.4214138, %v812_v61  ;;  %v840_v59 = vadd.f32 0.2548296, %v834_v63  ;;  %v1163_v36 = vpop.eup %1162 }
 0x395   :  { %v807_v7 = vadd.f32 -1.4531521, %v801_v1  ;;  %v1165_v42 = vpop.eup %1164  ;;  %v874_v46 = vmul.f32 %v1163_v36, %v844_v38  ;;  %v926_v38 = vld [vmem:[%s1465_s9 + $0x18] sm:$0xff] }
 0x396   :  { %v835_v6 = vmul.f32 %v1153_v19, %v829_v3  ;;  %v824_v9 = vmul.f32 %v1155_v41, %v818_v4  ;;  %v846_v16 = vmul.f32 %v1151_v8, %v840_v59  ;;  %v1167_v44 = vpop.eup %1166  ;;  %v875_v45 = vmul.f32 %v1165_v42, %v845_v27 }
 0x397   :  { %v813_v11 = vmul.f32 %v1157_v57, %v807_v7  ;;  %v880_v61 = vsub.f32 1.0, %v874_v46 }
 0x398   :  { %v841_v12 = vadd.f32 0.2548296, %v835_v6  ;;  %v830_v0 = vadd.f32 -0.28449672, %v824_v9  ;;  %v876_v40 = vmul.f32 %v1161_v29, %v846_v16  ;;  %v881_v50 = vsub.f32 1.0, %v875_v45  ;;  %v1169_v54 = vpop.eup %1168 }
 0x399   :  { %v819_v20 = vadd.f32 1.4214138, %v813_v11  ;;  %v892_v3 = vsub.f32 0.0, %v880_v61  ;;  %v764_v9 = vmul.f32 0.5, %v1383_v43  ;;  %v113_v29 = vadd.f32 %v1293_v35, %v67_v13 }
 0x39a   :  { %v847_v22 = vmul.f32 %v1153_v19, %v841_v12  ;;  %v836_v23 = vmul.f32 %v1155_v41, %v830_v0  ;;  %v882_v48 = vsub.f32 1.0, %v876_v40  ;;  %v762_v12 = vmul.f32 0.5, %v1365_v26  ;;  %v1143_v26 = vld [vmem:[%s1462_s8 + $0x8] sm:$0xff]  }
 0x39b   :  { %v825_v28 = vmul.f32 %v1157_v57, %v819_v20  ;;  %v898_v11 = vsel %vm886_vm11, %v880_v61, %v892_v3 }
 0x39c   :  { %v877_v31 = vmul.f32 %v1159_v24, %v847_v22  ;;  %v842_v32 = vadd.f32 0.2548296, %v836_v23  ;;  %v894_v55 = vsub.f32 0.0, %v882_v48  ;;  %v904_v56 = vadd.f32 1.0, %v898_v11 }
 0x39d   :  { %v831_v34 = vadd.f32 -0.28449672, %v825_v28  ;;  %v923_v28 = vld [vmem:[%s1465_s9] sm:$0xff] }
 0x39e   :  { %v848_v17 = vmul.f32 %v1155_v41, %v842_v32  ;;  %v883_v8 = vsub.f32 1.0, %v877_v31  ;;  %v893_v41 = vsub.f32 0.0, %v881_v50  ;;  %v900_v4 = vsel %vm888_vm8, %v882_v48, %v894_v55  ;;  %v68_v32 = vld [vmem:[%s1464_s3 + $0x8] sm:$0xff] }
 0x39f   :  { %v837_v25 = vmul.f32 %v1157_v57, %v831_v34  ;;  %v906_v6 = vadd.f32 1.0, %v900_v4  ;;  %v910_v52 = vmul.f32 %v904_v56, %v760_v33 }
 0x3a0   :  { %v878_v19 = vmul.f32 %v1167_v44, %v848_v17  ;;  %v895_v51 = vsub.f32 0.0, %v883_v8  ;;  %v899_v39 = vsel %vm887_vm9, %v881_v50, %v893_v41  ;;  %v924_v17 = vld [vmem:[%s1465_s9 + $0x8] sm:$0xff]  ;;  %v116_v44 = vadd.f32 %v1295_v37, %v68_v32 }
 0x3a1   :  { %v843_v49 = vadd.f32 0.2548296, %v837_v25  ;;  %v905_v21 = vadd.f32 1.0, %v899_v39  ;;  %v912_v20 = vmul.f32 %v906_v6, %v762_v12 }
 0x3a2   :  { %v884_v60 = vsub.f32 1.0, %v878_v19  ;;  %v901_v63 = vsel %vm889_vm6, %v883_v8, %v895_v51 }
 0x3a3   :  { %v849_v53 = vmul.f32 %v1157_v57, %v843_v49  ;;  %v907_v57 = vadd.f32 1.0, %v901_v63  ;;  %v911_v23 = vmul.f32 %v905_v21, %v761_v15 }
 0x3a4   :  { %v896_v58 = vsub.f32 0.0, %v884_v60 }
 0x3a5   :  { %v879_v62 = vmul.f32 %v1169_v54, %v849_v53  ;;  %v913_v0 = vmul.f32 %v907_v57, %v763_v47  ;;  %v920_v24 = vpack.c.bf16 %v911_v23, %v910_v52 }
 0x3a6   :  { %v902_v1 = vsel %vm890_vm7, %v884_v60, %v896_v58 }
 0x3a7   :  { %v885_v2 = vsub.f32 1.0, %v879_v62  ;;  %v908_v59 = vadd.f32 1.0, %v902_v1  ;;  %v921_v43 = vpack.c.bf16 %v913_v0, %v912_v20 }
 0x3a9   :  { %v897_v5 = vsub.f32 0.0, %v885_v2  ;;  %v914_v14 = vmul.f32 %v908_v59, %v764_v9 }
 0x3ab   :  { %v903_v7 = vsel %vm891_vm10, %v885_v2, %v897_v5 }
 0x3ac   :  { %v909_v10 = vadd.f32 1.0, %v903_v7 }
 0x3ae   :  { %v915_v16 = vmul.f32 %v909_v10, %v765_v30 }
 0x3b0   :  { %v922_v22 = vpack.c.bf16 %v915_v16, %v914_v14 }
 0x3b2   :  { %1126 = vmatprep.subr.bf16.mxu0 %v922_v22 }
 0x3b3   :  { %1127 = vmatpush3.bf16.msra.mxu0 %v922_v22 }
 0x3b4   :  { %1128 = vmatprep.subr.bf16.mxu0 %v921_v43 }
 0x3b7   :  { %1129 = vmatpush3.bf16.msra.mxu0 %v921_v43 }
 0x3b8   :  { %1130 = vmatprep.subr.bf16.mxu0 %v920_v24 }
 0x3bb   :  { %1131 = vmatpush3.bf16.msra.mxu0 %v920_v24 }
 0x3be   :  { %1133 = vmatmul.mubr.msk.bf16.vlgmr.msra.gmra.mxu0 %vm937_vm5, %v1143_v26 }
 0x47e   :  { %v1134_v27 = vpop.f32.mrf.mxu0 }
 0x47f   :  { %v987_v31 = vadd.f32 %v1134_v27, %v925_v18 }
 0x480   :  { %v978_v36 = vpop.f32.mrf.mxu0 }
 0x481   :  { %v993_v40 = vmul.f32 %v987_v31, %v113_v29  ;;  %v979_v34 = vadd.f32 %v978_v36, %v923_v28 }
 0x482   :  { %v1135_v42 = vpop.f32.mrf.mxu0 }
 0x483   :  { %v995_v35 = vadd.f32 %v993_v40, %v979_v34  ;;  %v990_v45 = vadd.f32 %v1135_v42, %v926_v38 }
 0x484   :  { %v981_v8 = vpop.f32.mrf.mxu0 }
 0x485   :  { %997 = vst [vmem:[%s1466_s10] sm:$0xff] %v995_v35  ;;  %v994_v25 = vmul.f32 %v990_v45, %v116_v44  ;;  %v982_v19 = vadd.f32 %v981_v8, %v924_v17 }
 0x487   :  { %v996_v46 = vadd.f32 %v994_v25, %v982_v19 }
 0x489   :  { %998 = vst [vmem:[%s1466_s10 + $0x8] sm:$0xff] %v996_v46 }

</bundles_post_ra>
